<compile_context>
chip_gen: v5e
topology: v5e:2x2
jax: 0.10.0
libtpu: 0.0.40
codegen_flags: <defaults>
</compile_context>

<pallas_src>
import functools

import jax
import jax.numpy as jnp
from jax.experimental import pallas as pl
from jax.experimental.pallas import tpu as pltpu


def _res_block_kernel(x_ref, w1_ref, b1_ref, w2_ref, b2_ref, o_ref, *, no_act):
    # x_ref: (tm, dim) row tile.  w*_ref: (dim, dim) resident weights in
    # (in, out) layout.  b*_ref: (1, dim) resident biases.
    x = x_ref[...].astype(jnp.float32)

    h = jnp.dot(x, w1_ref[...].astype(jnp.float32),
                preferred_element_type=jnp.float32)
    h = jnp.maximum(h + b1_ref[...].astype(jnp.float32), 0.0)

    y = jnp.dot(h, w2_ref[...].astype(jnp.float32),
                preferred_element_type=jnp.float32)
    y = y + b2_ref[...].astype(jnp.float32)
    if not no_act:
        y = jnp.maximum(y, 0.0)

    o_ref[...] = (y + x).astype(o_ref.dtype)


def res_block(x, w1, b1, w2, b2, *, no_act=False, row_tile=512):
    """ResBlock forward.

    x:  (..., dim)             input (any leading dims, Linear acts on last).
    w1: (dim, dim), b1: (dim,) first Linear  (PyTorch layout: (out, in)).
    w2: (dim, dim), b2: (dim,) second Linear (PyTorch layout: (out, in)).
    """
    orig_shape = x.shape
    dim = orig_shape[-1]
    x2d = x.reshape(-1, dim)
    n = x2d.shape[0]

    # PyTorch Linear computes x @ W.T; pre-transpose to (in, out) once.
    w1_t = jnp.transpose(w1)
    w2_t = jnp.transpose(w2)
    b1_2d = b1.reshape(1, dim)
    b2_2d = b2.reshape(1, dim)

    # --- row tiling ---------------------------------------------------------
    itemsize = jnp.dtype(x.dtype).itemsize
    min_rows = max(8, 32 // itemsize)          # f32->8, bf16->16, int8/fp8->32
    n_pad = ((n + min_rows - 1) // min_rows) * min_rows

    tm = min(row_tile, n_pad)
    tm = max(min_rows, (tm // min_rows) * min_rows)
    # Keep >= 2 grid steps when possible so the single "parallel" grid axis
    # still splits across both v7x TensorCores.
    if n_pad >= 2 * min_rows and n_pad // tm < 2:
        tm = max(min_rows, ((n_pad // 2) // min_rows) * min_rows)
    n_pad = ((n_pad + tm - 1) // tm) * tm

    if n_pad != n:
        x2d = jnp.pad(x2d, ((0, n_pad - n), (0, 0)))

    grid = (n_pad // tm,)

    # --- VMEM budget & cost estimate ---------------------------------------
    w_bytes = jnp.dtype(w1_t.dtype).itemsize
    vmem_needed = (
        2 * tm * dim * itemsize            # x, double-buffered
        + 2 * tm * dim * itemsize          # out, double-buffered
        + 2 * 2 * dim * dim * w_bytes      # w1, w2 (conservatively x2 buffers)
        + 2 * 2 * 8 * max(dim, 128) * 4    # biases (padded VMEM tiles)
        + 4 * tm * dim * 4                 # f32 intermediates headroom
    )
    vmem_limit = int(min(64 << 20, max(vmem_needed + (4 << 20), 16 << 20)))

    cost = pl.CostEstimate(
        flops=4 * n_pad * dim * dim,       # two (n,dim)x(dim,dim) matmuls
        transcendentals=0,
        bytes_accessed=(2 * n_pad * dim * itemsize      # x in + out
                        + 2 * dim * dim * w_bytes       # weights
                        + 2 * dim * 4),                 # biases
    )

    out2d = pl.pallas_call(
        functools.partial(_res_block_kernel, no_act=no_act),
        out_shape=jax.ShapeDtypeStruct((n_pad, dim), x.dtype),
        grid_spec=pltpu.PrefetchScalarGridSpec(
            num_scalar_prefetch=0,
            grid=grid,
            in_specs=[
                pl.BlockSpec((tm, dim), lambda i: (i, 0)),     # x rows
                pl.BlockSpec((dim, dim), lambda i: (0, 0)),    # W1 (resident)
                pl.BlockSpec((1, dim), lambda i: (0, 0)),      # b1 (resident)
                pl.BlockSpec((dim, dim), lambda i: (0, 0)),    # W2 (resident)
                pl.BlockSpec((1, dim), lambda i: (0, 0)),      # b2 (resident)
            ],
            out_specs=pl.BlockSpec((tm, dim), lambda i: (i, 0)),
        ),
        compiler_params=pltpu.CompilerParams(
            dimension_semantics=("parallel",),
            vmem_limit_bytes=vmem_limit,
        ),
        cost_estimate=cost,
    )(x2d, w1_t, b1_2d, w2_t, b2_2d)

    if n_pad != n:
        out2d = out2d[:n]
    return out2d.reshape(orig_shape)


def _reference(x, w1, b1, w2, b2, no_act=False):
    xf = x.astype(jnp.float32)
    h = jnp.maximum(xf @ w1.T.astype(jnp.float32) + b1.astype(jnp.float32), 0.0)
    y = h @ w2.T.astype(jnp.float32) + b2.astype(jnp.float32)
    if not no_act:
        y = jnp.maximum(y, 0.0)
    return (y + xf).astype(x.dtype)


if __name__ == "__main__":
    key = jax.random.PRNGKey(0)
    kx, kw1, kb1, kw2, kb2 = jax.random.split(key, 5)

    B, S, DIM = 2, 8, 32          # batch=2, seq=8, hidden=32

    x = jax.random.normal(kx, (B, S, DIM), dtype=jnp.float32)
    # PyTorch-layout Linear parameters: weight (out_features, in_features).
    scale = 1.0 / jnp.sqrt(DIM)
    w1 = jax.random.normal(kw1, (DIM, DIM), dtype=jnp.float32) * scale
    b1 = jax.random.normal(kb1, (DIM,), dtype=jnp.float32) * 0.1
    w2 = jax.random.normal(kw2, (DIM, DIM), dtype=jnp.float32) * scale
    b2 = jax.random.normal(kb2, (DIM,), dtype=jnp.float32) * 0.1

    out = res_block(x, w1, b1, w2, b2, no_act=False)
    out = jax.block_until_ready(out)

    ref = _reference(x, w1, b1, w2, b2, no_act=False)
    assert out.shape == (B, S, DIM)
    assert jnp.allclose(out, ref, atol=1e-4, rtol=1e-4), "mismatch vs reference"

    print("KERNEL_OK")
</pallas_src>

<mosaic_0001>
module attributes {stable_mosaic.version = 11 : i64} {
  func.func @_res_block_kernel(%arg0: i32, %arg1: memref<8x32xf32, #tpu.memory_space<vmem>>, %arg2: memref<32x32xf32, #tpu.memory_space<vmem>>, %arg3: memref<1x32xf32, #tpu.memory_space<vmem>>, %arg4: memref<32x32xf32, #tpu.memory_space<vmem>>, %arg5: memref<1x32xf32, #tpu.memory_space<vmem>>, %arg6: memref<8x32xf32, #tpu.memory_space<vmem>>) attributes {dimension_semantics = [#tpu.dimension_semantics<parallel>], iteration_bounds = array<i64: 2>, scalar_prefetch = 0 : i64, scratch_operands = 0 : i64, tpu.core_type = #tpu.core_type<tc>, window_params = [{transform_indices = @transform_0, window_bounds = array<i64: 8, 32>}, {pipeline_mode = #tpu.pipeline_mode<synchronous>, transform_indices = @transform_1, window_bounds = array<i64: 32, 32>}, {pipeline_mode = #tpu.pipeline_mode<synchronous>, transform_indices = @transform_2, window_bounds = array<i64: 1, 32>}, {pipeline_mode = #tpu.pipeline_mode<synchronous>, transform_indices = @transform_3, window_bounds = array<i64: 32, 32>}, {pipeline_mode = #tpu.pipeline_mode<synchronous>, transform_indices = @transform_4, window_bounds = array<i64: 1, 32>}, {transform_indices = @transform_5, window_bounds = array<i64: 8, 32>}]} {
    %c0 = arith.constant 0 : index
    %c0_0 = arith.constant 0 : index
    %0 = vector.load %arg1[%c0, %c0_0] : memref<8x32xf32, #tpu.memory_space<vmem>>, vector<8x32xf32>
    %c0_1 = arith.constant 0 : index
    %c0_2 = arith.constant 0 : index
    %1 = vector.load %arg2[%c0_1, %c0_2] : memref<32x32xf32, #tpu.memory_space<vmem>>, vector<32x32xf32>
    %cst = arith.constant dense<0.000000e+00> : vector<8x32xf32>
    %2 = tpu.matmul %0, %1, %cst {dimension_numbers = #tpu.dot_dimension_numbers<[1], [0], [0], [1], [0, 0, 1, 1], [], []>} : vector<8x32xf32>, vector<32x32xf32>, vector<8x32xf32> -> vector<8x32xf32>
    %c0_3 = arith.constant 0 : index
    %c0_4 = arith.constant 0 : index
    %3 = vector.load %arg3[%c0_3, %c0_4] : memref<1x32xf32, #tpu.memory_space<vmem>>, vector<1x32xf32>
    %4 = vector.broadcast %3 : vector<1x32xf32> to vector<8x32xf32>
    %5 = arith.addf %2, %4 : vector<8x32xf32>
    %cst_5 = arith.constant 0.000000e+00 : f32
    %6 = vector.broadcast %cst_5 : f32 to vector<8x32xf32>
    %7 = arith.maximumf %5, %6 : vector<8x32xf32>
    %c0_6 = arith.constant 0 : index
    %c0_7 = arith.constant 0 : index
    %8 = vector.load %arg4[%c0_6, %c0_7] : memref<32x32xf32, #tpu.memory_space<vmem>>, vector<32x32xf32>
    %cst_8 = arith.constant dense<0.000000e+00> : vector<8x32xf32>
    %9 = tpu.matmul %7, %8, %cst_8 {dimension_numbers = #tpu.dot_dimension_numbers<[1], [0], [0], [1], [0, 0, 1, 1], [], []>} : vector<8x32xf32>, vector<32x32xf32>, vector<8x32xf32> -> vector<8x32xf32>
    %c0_9 = arith.constant 0 : index
    %c0_10 = arith.constant 0 : index
    %10 = vector.load %arg5[%c0_9, %c0_10] : memref<1x32xf32, #tpu.memory_space<vmem>>, vector<1x32xf32>
    %11 = vector.broadcast %10 : vector<1x32xf32> to vector<8x32xf32>
    %12 = arith.addf %9, %11 : vector<8x32xf32>
    %cst_11 = arith.constant 0.000000e+00 : f32
    %13 = vector.broadcast %cst_11 : f32 to vector<8x32xf32>
    %14 = arith.maximumf %12, %13 : vector<8x32xf32>
    %15 = arith.addf %14, %0 : vector<8x32xf32>
    %c0_12 = arith.constant 0 : index
    %c0_13 = arith.constant 0 : index
    %16 = vector.load %arg6[%c0_12, %c0_13] : memref<8x32xf32, #tpu.memory_space<vmem>>, vector<8x32xf32>
    tpu.vector_store %arg6[%c0_12, %c0_13], %15 {strides = array<i32>} : memref<8x32xf32, #tpu.memory_space<vmem>>, vector<8x32xf32>,
    return
  }
  func.func @transform_0(%arg0: i32) -> (i32, i32) {
    %c0_i32 = arith.constant 0 : i32
    %c0_i32_0 = arith.constant 0 : i32
    return %arg0, %c0_i32 : i32, i32
  }
  func.func @transform_1(%arg0: i32) -> (i32, i32) {
    %c0_i32 = arith.constant 0 : i32
    %c0_i32_0 = arith.constant 0 : i32
    %c0_i32_1 = arith.constant 0 : i32
    return %c0_i32, %c0_i32_0 : i32, i32
  }
  func.func @transform_2(%arg0: i32) -> (i32, i32) {
    %c0_i32 = arith.constant 0 : i32
    %c0_i32_0 = arith.constant 0 : i32
    %c0_i32_1 = arith.constant 0 : i32
    return %c0_i32, %c0_i32_0 : i32, i32
  }
  func.func @transform_3(%arg0: i32) -> (i32, i32) {
    %c0_i32 = arith.constant 0 : i32
    %c0_i32_0 = arith.constant 0 : i32
    %c0_i32_1 = arith.constant 0 : i32
    return %c0_i32, %c0_i32_0 : i32, i32
  }
  func.func @transform_4(%arg0: i32) -> (i32, i32) {
    %c0_i32 = arith.constant 0 : i32
    %c0_i32_0 = arith.constant 0 : i32
    %c0_i32_1 = arith.constant 0 : i32
    return %c0_i32, %c0_i32_0 : i32, i32
  }
  func.func @transform_5(%arg0: i32) -> (i32, i32) {
    %c0_i32 = arith.constant 0 : i32
    %c0_i32_0 = arith.constant 0 : i32
    return %arg0, %c0_i32 : i32, i32
  }
}

</mosaic_0001>

<bundles_post_ra>
// kernel: tpu_custom_call.1
= control target key start
LH: loop header
LB: loop body
LE: loop exit
PB: predicated region body
PF: predicated region fallthrough
CT: control target
= control target key end

     0   :  { %10 = vsyncpa [#allocation3], 0  ;;  %s891_s0 = inlined_call_operand.hbm [shape: f32[16,32], index: 0, kind: input, shape index: {}]   ;;  %s892_s1 = inlined_call_operand.hbm [shape: f32[32,32], index: 1, kind: input, shape index: {}]   ;;  %s893_s2 = inlined_call_operand.vmem [shape: f32[1,32], index: 2, kind: input, shape index: {}]   ;;  %s894_s3 = inlined_call_operand.hbm [shape: f32[32,32], index: 3, kind: input, shape index: {}]   ;;  %s895_s4 = inlined_call_operand.vmem [shape: f32[1,32], index: 4, kind: input, shape index: {}]   ;;  %s896_s5 = inlined_call_operand.hbm [shape: f32[16,32], index: 5, kind: output, shape index: {}]  }
   0x1   :  { %12 = vsyncpa [#allocation3 + $0x1], 0 }
   0x2   :  { %13 = vsyncpa [#allocation6], 0 }
   0x3   :  { %14 = vsyncpa [#allocation4], 0 }
   0x4   :  { %16 = vsyncpa [#allocation4 + $0x1], 0  ;;  %s733_s18 = smov 0   ;;  %s735_s19 = smov 0  }
   0x5   :  { %s737_s20 = smov 0   ;;  %s739_s21 = smov 0  }
   0x6 LB: > { %s174_s24 = sshll.u32 %s892_s1, 4  ;;  %s757_s25 = sadd.s32 4294967295, %s697_s21   ;;  %s697_s21 = sphi %s739_s21, %s907_s21   ;;  %s693_s20 = sphi %s737_s20, %s906_s20   ;;  %s689_s19 = sphi %s735_s19, %s905_s19   ;;  %s685_s18 = sphi %s733_s18, %s904_s18   ;;  %s175_s24 = int_to_ptr.hbm [resolvable:$true] %s174_s24 }
   0x7   : > { %p449_p0 = scmp.ge.s32.totalorder %s697_s21, 1  ;;  %p43_p1 = scmp.eq.s32.totalorder %s757_s25, 0 }
   0x8   : > { %p163_p2 = scmp.lt.s32.totalorder %s697_s21, 3  ;;  %s699_s27 = smov [#allocation5]  }
   0x9   : > { %s176_s28 = sshll.u32 %s699_s27, 4  ;;  %s191_s6 = sshll.u32 %s894_s3, 4  ;;  %s177_s28 = int_to_ptr.vmem [resolvable:$true] %s176_s28  ;;  %s192_s6 = int_to_ptr.hbm [resolvable:$true] %s191_s6 }
   0xa   : > { %p762_p3 = pnand %p449_p0, %p163_p2  ;;  %s700_s7 = smov [#allocation7]  }
   0xb   : > { %s193_s8 = sshll.u32 %s700_s7, 4  ;;  %s701_s9 = smov 128   ;;  %s194_s8 = int_to_ptr.vmem [resolvable:$true] %s193_s8 }
   0xc   : > { %p478_p4 = pneg %p762_p3  ;;  %s702_s10 = smov 8  }
   0xd   : > { %s448_s11 = sadd.s32 4294967294, %s697_s21   ;;  %s776_s12 = sadd.s32 1, %s697_s21  }
   0xe   : > { %p479_p6 = pnand %p478_p4, %p43_p1  ;;  %s26_s13 = ssub.s32 %s697_s21, %s776_s12 }
   0xf   : > { %s29_s14 = sadd.s32 1, %s693_s20  ;;  %p27_p7 = scmp.eq.s32.totalorder %s26_s13, 0 }
  0x10   : > { %481 = dma.hbm_to_vmem [thread:$0]  (!%p479_p6), %s175_s24, 512, %s177_s28, [#allocation6], %s701_s9, %s701_s9, %s702_s10  }
  0x11   : > { %484 = dma.hbm_to_vmem [thread:$0]  (!%p479_p6), %s192_s6, 512, %s194_s8, [#allocation6], %s701_s9, %s701_s9, %s702_s10  }
  0x12   : > { %p36_p8 = scmp.ne.s32.totalorder %s693_s20, %s689_s19  ;;  %p37_p9 = scmp.eq.s32.totalorder %s697_s21, 0 }
  0x13   : > { %p42_p10 = scmp.ne.s32.totalorder %s689_s19, %s685_s18  ;;  %p150_p13 = scmp.eq.s32.totalorder %s757_s25, 1 }
  0x14   : > { %s787_s15 = scalar_select %p27_p7, %s693_s20, %s29_s14  }
  0x15   : > { %p789_p11 = por %p37_p9, %p36_p8  ;;  %p795_p12 = por %p43_p1, %p42_p10 }
  0x16   : > { %p156_p0 = scmp.eq.s32.totalorder %s448_s11, 1  ;;  %p495_p2 = scmp.lt.s32.totalorder %s697_s21, 2 }
  0x17   : > { %s210_s22 = sand.u32 1, %s693_s20   ;;  %p802_p4 = por %p150_p13, %p36_p8 }
  0x18   : > { %p806_p6 = por %p156_p0, %p42_p10  ;;  %s453_s27 = sshll.u32 %s210_s22, 3 }
  0x19   : > { %s454_s28 = sshll.u32 %s697_s21, 3  ;;  %s214_s7 = scalar_lea.vmem [#allocation2], %s453_s27 }
  0x1a   : > { %s218_s6 = scalar_lea.hbm %s891_s0, %s454_s28  ;;  %s222_s8 = sshll.u32 %s214_s7, 4  ;;  %s223_s8 = int_to_ptr.vmem [resolvable:$true] %s222_s8 }
  0x1b   : > { %s220_s9 = sshll.u32 %s218_s6, 4  ;;  %p816_p7 = pnand %p495_p2, %p789_p11  ;;  %s221_s9 = int_to_ptr.hbm [resolvable:$true] %s220_s9 }
  0x1c   : > { %s211_s11 = scalar_lea.sflag [#allocation3], %s210_s22  ;;  %s597_s13 = sshra.s32 %s221_s9, 4  ;;  %s598_s13 = int_to_ptr.hbm [resolvable:$true] %s597_s13 }
  0x1d   : > { %s599_s14 = scalar_lea.hbm %s598_s13, 8  ;;  %p601_p9 = pneg %p816_p7 }
  0x1e   : > { %p600_p8 = scmp.ne.s32.totalorder %s598_s13, %s599_s14  ;;  %s604_s29 = scalar_lea.hbm %s891_s0, 16 }
  0x1f   : > { %p605_p11 = scmp.lt.s32.totalorder %s598_s13, %s891_s0  ;;  %p606_p0 = scmp.lt.s32.totalorder %s604_s29, %s599_s14 }
  0x20   : > { %p602_p10 = pnand %p601_p9, %p600_p8 }
  0x21   : > { %p607_p2 = por %p606_p0, %p605_p11 }
  0x22   : > { %p603_p13 = pneg %p602_p10 }
  0x24   : > { %p608_p5 = pnand %p607_p2, %p603_p13 }
  0x26   : > { %611 = shalt.err (!%p608_p5)
}
  0x27   : > { %488 = dma.hbm_to_vmem [thread:$0]  (!%p816_p7), %s221_s9, 128, %s223_s8, %s211_s11  }
  0x28   : > { %231 = sbr.rel (%p762_p3) target bundleno = 321 (0x141), region = 40  ;;  %s833_s22 = sand.u32 (!%p762_p3), 1, %s689_s19  }
  0x29   : > { %s456_s6 = sshll.u32 (!%p762_p3), %s833_s22, 3  ;;  %s234_s7 = scalar_lea.sflag (!%p762_p3), [#allocation3], %s833_s22 }
  0x2a   : > { %s237_s13 = scalar_lea.vmem (!%p762_p3), [#allocation2], %s456_s6 }
  0x2d   : > { %672 = dma.done.wait (%p795_p12), %s234_s7, 128  }
  0x2e   : > { %674 = vsyncadd (%p795_p12), %s234_s7, 4294967168 }
  0x2f   : > { %676 = dma.done.wait (%p43_p1), [#allocation6], 1024  }
  0x30   : > { %678 = vsyncadd (%p43_p1), [#allocation6], 4294966272  ;;  %v279_v0 = vld [vmem:[#allocation5 + $0x18] sm:$0xff]  ;;  %v278_v1 = vld [vmem:[#allocation5 + $0x10] sm:$0xff]  ;;  %vm284_vm0 = vcmask 261120   ;;  %s463_s8 = sshll.u32 %s757_s25, 3 }
  0x31   : > { %300 = vmatpush.msra.mxu0 %v279_v0  ;;  %v312_v2 = vld [vmem:[#allocation7 + $0x18] sm:$0xff]  ;;  %v277_v3 = vld [vmem:[#allocation5 + $0x8] sm:$0xff]  ;;  %v276_v4 = vld [vmem:[#allocation5] sm:$0xff]  ;;  %s354_s27 = scalar_lea.hbm %s896_s5, %s463_s8  ;;  %s274_s28 = scalar_lea.vmem [#allocation8], %s456_s6 }
  0x32   : > { %332 = vmatpush.msra.mxu1 %v312_v2  ;;  %v275_v5 = vld [vmem:[%s237_s13] sm:$0xff]  ;;  %v310_v7 = vld [vmem:[#allocation7 + $0x8] sm:$0xff]  ;;  %v309_v8 = vld [vmem:[#allocation7] sm:$0xff]  ;;  %s356_s29 = sshll.u32 %s274_s28, 4  ;;  %s358_s30 = sshll.u32 %s354_s27, 4  ;;  %s357_s29 = int_to_ptr.vmem [resolvable:$true] %s356_s29  ;;  %s359_s30 = int_to_ptr.hbm [resolvable:$true] %s358_s30 }
  0x33   : > { %301 = vmatpush.msra.mxu0 %v278_v1  ;;  %v311_v6 = vld [vmem:[#allocation7 + $0x10] sm:$0xff]  ;;  %s344_s25 = scalar_lea.sflag [#allocation4], %s833_s22  ;;  %s641_s16 = sshra.s32 %s359_s30, 4  ;;  %s642_s16 = int_to_ptr.hbm [resolvable:$true] %s641_s16 }
  0x34   : > { %333 = vmatpush.msra.mxu1 %v311_v6  ;;  %v535_v9 = vld [vmem:[%s893_s2] ss:$0 sm:$0xff]  ;;  %s643_s7 = scalar_lea.hbm %s642_s16, 8  ;;  %s647_s6 = scalar_lea.hbm %s896_s5, 16 }
  0x35   : > { %302 = vmatpush.msra.mxu0 %v277_v3  ;;  %v536_v13 = vld [vmem:[%s895_s4] ss:$0 sm:$0xff]  ;;  %p644_p1 = scmp.ne.s32.totalorder %s642_s16, %s643_s7  ;;  %p648_p12 = scmp.lt.s32.totalorder %s642_s16, %s896_s5 }
  0x36   : > { %334 = vmatpush.msra.mxu1 %v310_v7  ;;  %p649_p7 = scmp.lt.s32.totalorder %s647_s6, %s643_s7 }
  0x37   : > { %303 = vmatpush.msra.mxu0 %v276_v4  ;;  %p645_p3 = pnand %p644_p1, %p802_p4 }
  0x38   : > { %460 = vmatmul.msk.f32.vlgmr.msra.gmra.mxu0 %vm284_vm0, %v275_v5  ;;  %335 = vmatpush.msra.mxu1 %v309_v8  ;;  %p650_p8 = por %p649_p7, %p648_p12 }
  0x39   : > { %p646_p5 = pneg %p645_p3 }
  0x3b   : > { %p651_p9 = pnand %p650_p8, %p646_p5 }
  0xb5   : > { %v305_v10 = vpop.f32.mrf.mxu0 }
  0xb6   : > { %v306_v11 = vadd.f32 %v535_v9, %v305_v10 }
  0xb8   : > { %v308_v12 = vmax.f32 %v306_v11, 0.0 }
  0xba   : > { %461 = vmatmul.msk.f32.vlgmr.msra.gmra.mxu1 %vm284_vm0, %v308_v12 }
 0x137   : > { %v337_v14 = vpop.f32.mrf.mxu1 }
 0x138   : > { %v338_v15 = vadd.f32 %v536_v13, %v337_v14 }
 0x13a   : > { %v340_v16 = vmax.f32 %v338_v15, 0.0 }
 0x13c   : > { %v341_v17 = vadd.f32 %v340_v16, %v275_v5 }
 0x13e   : > { %342 = vst.msk [vmem:[%s274_s28] sm:$0xff] %vm284_vm0, %v341_v17 }
 0x13f   : > { %654 = shalt.err (!%p651_p9)
}
 0x140   : > { %476 = dma.vmem_to_hbm [thread:$0]  (%p802_p4), %s357_s29, 128, %s359_s30, %s344_s25  }
 0x141 PF: > { %s370_s22 = sand.u32 1, %s685_s18   ;;  %p903_p10 = scmp.ge.s32.totalorder %s697_s21, 2 }
 0x142   : > { %s371_s9 = scalar_lea.sflag [#allocation4], %s370_s22 }
 0x143   : > { %p490_p13 = pnand %p903_p10, %p806_p6 }
 0x145   : > { %p491_p11 = pneg %p490_p13 }
 0x147   : > { %680 = dma.done.wait (%p491_p11), %s371_s9, 128  }
 0x148   : > { %682 = vsyncadd (%p491_p11), %s371_s9, 4294967168  ;;  %p19_p0 = scmp.ge.s32.totalorder %s776_s12, 4   ;;  %s904_s18 = smov %s689_s19 }
 0x149   : > { %s905_s19 = smov %s693_s20  ;;  %s906_s20 = smov %s787_s15 }
 0x14a   : > { %s907_s21 = smov %s776_s12  ;;  %21 = sbr.rel (!%p19_p0) target bundleno = 6 (0x6), region = 93 }
 0x14f   :  { %377 = vsyncpa [#allocation3], 1 }
 0x150   :  { %379 = vsyncpa [#allocation3 + $0x1], 1 }
 0x151   :  { %380 = vsyncpa [#allocation6], 1 }
 0x152   :  { %381 = vsyncpa [#allocation4], 1 }
 0x153   :  { %383 = vsyncpa [#allocation4 + $0x1], 1 }

</bundles_post_ra>
